<compile_context>
chip_gen: v6e
topology: v6e:2x2x1
jax: 0.10.0
libtpu: 0.0.40
codegen_flags: <defaults>
</compile_context>

<pallas_src>
import jax
import jax.numpy as jnp
from jax.experimental import pallas as pl
from jax.experimental.pallas import tpu as pltpu


def _pe_add_kernel(x_ref, pe_ref, o_ref):
    # x_ref: (B, ts, E) tile of the input; pe_ref: (ts, E) tile of the table.
    # Broadcast-add over the batch dim; keep everything in the storage dtype
    # (no redundant full-tile casts inside the loop).
    o_ref[...] = (x_ref[...] + pe_ref[...]).astype(o_ref.dtype)


def make_positional_encoding_table(embed, max_len, dtype=jnp.float32):
    """Builds the same sinusoidal table as the PyTorch __init__."""
    pos = jnp.arange(max_len, dtype=jnp.float32)[:, None]          # (max_len, 1)
    i = jnp.arange(embed)[None, :]                                  # (1, embed)
    denom = jnp.power(10000.0, (i // 2 * 2.0 / embed).astype(jnp.float32))
    angles = pos / denom                                            # (max_len, embed)
    pe = jnp.where(i % 2 == 0, jnp.sin(angles), jnp.cos(angles))
    return pe.astype(dtype)


def positional_encoding_forward(x, pe, *, ts=None):
    """x: (B, S, E).  pe: (max_len, E) with max_len >= S.  Returns (B, S, E)."""
    B, S, E = x.shape
    assert pe.shape[1] == E and pe.shape[0] >= S, "pe table too small"
    pe_s = pe[:S, :]

    # Pick the largest sequence tile (multiple of 8, capped at 512) that
    # divides S; fall back to the full sequence for tiny inputs.  Big tiles
    # amortize the ~0.35 us per-grid-step overhead for this mem-bound add.
    if ts is None:
        ts = S
        for cand in (512, 256, 128, 64, 32, 16, 8):
            if S % cand == 0:
                ts = cand
                break
    assert S % ts == 0, "sequence length must tile evenly"

    out = pl.pallas_call(
        _pe_add_kernel,
        out_shape=jax.ShapeDtypeStruct((B, S, E), x.dtype),
        grid_spec=pltpu.PrefetchScalarGridSpec(
            num_scalar_prefetch=0,
            grid=(S // ts,),
            in_specs=[
                pl.BlockSpec((B, ts, E), lambda i: (0, i, 0)),   # x tile
                pl.BlockSpec((ts, E), lambda i: (i, 0)),         # pe tile
            ],
            out_specs=pl.BlockSpec((B, ts, E), lambda i: (0, i, 0)),
        ),
        compiler_params=pltpu.CompilerParams(
            dimension_semantics=("parallel",)),
    )(x, pe_s)
    return out


def _reference(x, pe):
    # Pure-JAX mirror of the PyTorch forward.
    S = x.shape[1]
    return x + pe[:S, :][None, :, :]


if __name__ == "__main__":
    # Small demo shapes; embed chosen lane-dense (multiple of 128).
    B, S, embed, max_len = 2, 16, 128, 32

    key = jax.random.PRNGKey(0)
    x = jax.random.normal(key, (B, S, embed), dtype=jnp.float32)

    pe = make_positional_encoding_table(embed, max_len)   # buffer, not learned
    # TODO(synk): the module's `dropout` arg is never applied in its forward,
    # so no dropout is implemented here.

    out = positional_encoding_forward(x, pe)
    out = jax.block_until_ready(out)

    ref = _reference(x, pe)
    assert out.shape == (B, S, embed)
    assert jnp.allclose(out, ref, atol=1e-6, rtol=1e-6), "mismatch vs reference"

    print("KERNEL_OK")
</pallas_src>

<mosaic_0001>
module attributes {stable_mosaic.version = 11 : i64} {
  func.func @_pe_add_kernel(%arg0: i32, %arg1: memref<2x16x128xf32, #tpu.memory_space<vmem>>, %arg2: memref<16x128xf32, #tpu.memory_space<vmem>>, %arg3: memref<2x16x128xf32, #tpu.memory_space<vmem>>) attributes {dimension_semantics = [#tpu.dimension_semantics<parallel>], iteration_bounds = array<i64: 1>, scalar_prefetch = 0 : i64, scratch_operands = 0 : i64, tpu.core_type = #tpu.core_type<tc>, window_params = [{transform_indices = @transform_0, window_bounds = array<i64: 2, 16, 128>}, {transform_indices = @transform_1, window_bounds = array<i64: 16, 128>}, {transform_indices = @transform_2, window_bounds = array<i64: 2, 16, 128>}]} {
    %c0 = arith.constant 0 : index
    %c0_0 = arith.constant 0 : index
    %c0_1 = arith.constant 0 : index
    %0 = vector.load %arg1[%c0, %c0_0, %c0_1] : memref<2x16x128xf32, #tpu.memory_space<vmem>>, vector<2x16x128xf32>
    %c0_2 = arith.constant 0 : index
    %c0_3 = arith.constant 0 : index
    %1 = vector.load %arg2[%c0_2, %c0_3] : memref<16x128xf32, #tpu.memory_space<vmem>>, vector<16x128xf32>
    %2 = vector.shape_cast %1 : vector<16x128xf32> to vector<1x16x128xf32>
    %3 = vector.broadcast %2 : vector<1x16x128xf32> to vector<2x16x128xf32>
    %4 = arith.addf %0, %3 : vector<2x16x128xf32>
    %c0_4 = arith.constant 0 : index
    %c0_5 = arith.constant 0 : index
    %c0_6 = arith.constant 0 : index
    %5 = vector.load %arg3[%c0_4, %c0_5, %c0_6] : memref<2x16x128xf32, #tpu.memory_space<vmem>>, vector<2x16x128xf32>
    tpu.vector_store %arg3[%c0_4, %c0_5, %c0_6], %4 {strides = array<i32>} : memref<2x16x128xf32, #tpu.memory_space<vmem>>, vector<2x16x128xf32>,
    return
  }
  func.func @transform_0(%arg0: i32) -> (i32, i32, i32) {
    %c0_i32 = arith.constant 0 : i32
    %c0_i32_0 = arith.constant 0 : i32
    %c0_i32_1 = arith.constant 0 : i32
    return %c0_i32, %arg0, %c0_i32_0 : i32, i32, i32
  }
  func.func @transform_1(%arg0: i32) -> (i32, i32) {
    %c0_i32 = arith.constant 0 : i32
    %c0_i32_0 = arith.constant 0 : i32
    return %arg0, %c0_i32 : i32, i32
  }
  func.func @transform_2(%arg0: i32) -> (i32, i32, i32) {
    %c0_i32 = arith.constant 0 : i32
    %c0_i32_0 = arith.constant 0 : i32
    %c0_i32_1 = arith.constant 0 : i32
    return %c0_i32, %arg0, %c0_i32_0 : i32, i32, i32
  }
}

</mosaic_0001>

<bundles_post_ra>
// kernel: tpu_custom_call.1
= control target key start
LH: loop header
LB: loop body
LE: loop exit
PB: predicated region body
PF: predicated region fallthrough
CT: control target
= control target key end

     0   :  { %7 = vsyncpa [#allocation3], 0  ;;  %s181_s0 = inlined_call_operand.hbm [shape: f32[2,16,128], index: 0, kind: input, shape index: {}]   ;;  %s182_s1 = inlined_call_operand.hbm [shape: f32[16,128], index: 1, kind: input, shape index: {}]   ;;  %s183_s2 = inlined_call_operand.hbm [shape: f32[2,16,128], index: 2, kind: output, shape index: {}]  }
   0x1   :  { %8 = vsyncpa [#allocation6], 0 }
   0x2   :  { %9 = vsyncpa [#allocation4], 0  ;;  %s143_s9 = smov [#allocation2]  }
   0x3   :  { %s15_s10 = sshll.u32 %s143_s9, 4  ;;  %s16_s10 = int_to_ptr.vmem [resolvable:$true] %s15_s10 }
   0x4   :  { %s85_s11 = scalar_lea.vmem %s16_s10, 512  ;;  %p90_p1 = scmp.lt.s32.totalorder %s16_s10, %s16_s10 }
   0x5   :  { %p86_p0 = scmp.ne.s32.totalorder %s16_s10, %s85_s11  ;;  %p91_p2 = scmp.lt.s32.totalorder %s85_s11, %s85_s11 }
   0x7   :  { %p92_p3 = por %p91_p2, %p90_p1 }
   0x9   :  { %p93_p4 = pnand %p92_p3, %p86_p0 }
   0xb   :  { %96 = shalt.err (!%p93_p4)
}
   0xc   :  { %s144_s12 = smov 128   ;;  %s145_s13 = smov 8  }
   0xd   :  { %21 = dma.hbm_to_vmem [thread:$0]  %s181_s0, 512, %s16_s10, [#allocation3], %s144_s12, %s144_s12, %s145_s13  }
   0xe   :  { %s146_s16 = smov [#allocation5]  }
   0xf   :  { %s27_s17 = sshll.u32 %s146_s16, 4  ;;  %s28_s17 = int_to_ptr.vmem [resolvable:$true] %s27_s17 }
  0x10   :  { %s105_s18 = scalar_lea.vmem %s28_s17, 256  ;;  %p110_p6 = scmp.lt.s32.totalorder %s28_s17, %s28_s17 }
  0x11   :  { %p106_p5 = scmp.ne.s32.totalorder %s28_s17, %s105_s18  ;;  %p111_p7 = scmp.lt.s32.totalorder %s105_s18, %s105_s18 }
  0x13   :  { %p112_p8 = por %p111_p7, %p110_p6 }
  0x15   :  { %p113_p9 = pnand %p112_p8, %p106_p5 }
  0x17   :  { %116 = shalt.err (!%p113_p9)
}
  0x18   :  { %33 = dma.hbm_to_vmem [thread:$0]  %s182_s1, 256, %s28_s17, [#allocation6], %s144_s12, %s144_s12, %s145_s13  }
  0x19   :  { %137 = dma.done.wait [#allocation3], 512  }
  0x1a   :  { %138 = vsyncadd [#allocation3], 4294966784 }
  0x1b   :  { %139 = dma.done.wait [#allocation6], 256  }
  0x1c   :  { %140 = vsyncadd [#allocation6], 4294967040  ;;  %s147_s0 = smov [#allocation7]   ;;  %v40_v0 = vld [vmem:[#allocation2] sm:$0xff]  ;;  %v41_v2 = vld [vmem:[#allocation2 + $0x8] sm:$0xff] }
  0x1d   :  { %s59_s21 = sshll.u32 %s147_s0, 4  ;;  %v44_v1 = vld [vmem:[#allocation5] sm:$0xff]  ;;  %v45_v4 = vld [vmem:[#allocation5 + $0x8] sm:$0xff]  ;;  %v42_v5 = vld [vmem:[#allocation2 + $0x10] sm:$0xff]  ;;  %s60_s21 = int_to_ptr.vmem [resolvable:$true] %s59_s21 }
  0x1e   :  { %v46_v3 = vadd.f32 %v44_v1, %v40_v0  ;;  %v43_v6 = vld [vmem:[#allocation2 + $0x18] sm:$0xff]  ;;  %v47_v7 = vadd.f32 %v45_v4, %v41_v2  ;;  %v48_v8 = vadd.f32 %v44_v1, %v42_v5  ;;  %s117_s1 = scalar_lea.vmem %s60_s21, 512  ;;  %p122_p11 = scmp.lt.s32.totalorder %s60_s21, %s60_s21 }
  0x1f   :  { %v49_v9 = vadd.f32 %v45_v4, %v43_v6  ;;  %p118_p10 = scmp.ne.s32.totalorder %s60_s21, %s117_s1  ;;  %p123_p12 = scmp.lt.s32.totalorder %s117_s1, %s117_s1 }
  0x20   :  { %50 = vst [vmem:[#allocation7] sm:$0xff] %v46_v3  ;;  %51 = vst [vmem:[#allocation7 + $0x8] sm:$0xff] %v47_v7 }
  0x21   :  { %52 = vst [vmem:[#allocation7 + $0x10] sm:$0xff] %v48_v8  ;;  %53 = vst [vmem:[#allocation7 + $0x18] sm:$0xff] %v49_v9  ;;  %p124_p13 = por %p123_p12, %p122_p11 }
  0x23   :  { %p125_p0 = pnand %p124_p13, %p118_p10 }
  0x25   :  { %128 = shalt.err (!%p125_p0)
}
  0x26   :  { %65 = dma.vmem_to_hbm [thread:$0]  %s60_s21, 512, %s183_s2, [#allocation4], %s144_s12, %s144_s12, %s145_s13  }
  0x27   :  { %141 = dma.done.wait [#allocation4], 512  }
  0x28   :  { %142 = vsyncadd [#allocation4], 4294966784 }
  0x29   :  { %69 = vsyncpa [#allocation3], 1 }
  0x2a   :  { %70 = vsyncpa [#allocation6], 1 }
  0x2b   :  { %71 = vsyncpa [#allocation4], 1 }

</bundles_post_ra>
